<compile_context>
chip_gen: v6e
topology: v6e:2x2x1
jax: 0.10.0
libtpu: 0.0.40
codegen_flags: <defaults>
</compile_context>

<pallas_src>
import jax
import jax.numpy as jnp
import numpy as np
from jax.experimental import pallas as pl
from jax.experimental.pallas import tpu as pltpu

_H0, _H1 = 256, 128            # hidden widths of the Generator MLP
_OUT_PAD = 128                 # last-layer weight padded to one full lane width
_B_OFF0, _B_OFF1, _B_OFF2 = 0, _H0, _H0 + _H1
_B_LANES = _H0 + _H1 + _OUT_PAD  # 512 packed-bias lanes (all offsets % 128 == 0)


def generator_kernel(x_ref, w0_ref, w1_ref, w2_ref, b_ref, o_ref):
    """One batch tile: (tm, D_in) -> (tm, out_dim).

    Weights and the packed bias vector are VMEM-resident across all batch tiles
    (constant index_maps). All matmuls accumulate in f32; activations stay f32.
    """
    out_dim = o_ref.shape[-1]
    x = x_ref[...]
    # Linear(in, 256) + ReLU
    h = jnp.dot(x, w0_ref[...], preferred_element_type=jnp.float32)
    h = jnp.maximum(h + b_ref[0:1, _B_OFF0:_B_OFF0 + _H0], 0.0)
    # Linear(256, 128) + ReLU
    h = jnp.dot(h, w1_ref[...], preferred_element_type=jnp.float32)
    h = jnp.maximum(h + b_ref[0:1, _B_OFF1:_B_OFF1 + _H1], 0.0)
    # Linear(128, out)  (weight padded to 128 lanes; padding columns are zero)
    h = jnp.dot(h, w2_ref[...], preferred_element_type=jnp.float32)
    h = h + b_ref[0:1, _B_OFF2:_B_OFF2 + _OUT_PAD]
    o_ref[...] = h[:, :out_dim].astype(o_ref.dtype)


def _pick_tm(batch, tm_max):
    """Batch tile: tm_max for large B; a single (sublane-aligned) step for small B."""
    if batch >= tm_max:
        return tm_max
    if batch <= 8:
        return batch                      # block equals the full batch dim
    return ((batch + 7) // 8) * 8         # one grid step; Pallas masks the edge


def generator_forward(x, packed, *, out_dim, tm=512):
    """x: [B, D_in] f32. packed = (w0, w1, w2_padded, bias_packed), all f32."""
    w0, w1, w2, bias = packed
    B, d_in = x.shape
    tm = _pick_tm(B, tm)
    grid = (pl.cdiv(B, tm),)

    flops = 2 * B * (d_in * _H0 + _H0 * _H1 + _H1 * _OUT_PAD)
    bytes_accessed = 4 * (w0.size + w1.size + w2.size + bias.size
                          + B * d_in + B * out_dim)

    out = pl.pallas_call(
        generator_kernel,
        out_shape=jax.ShapeDtypeStruct((B, out_dim), jnp.float32),
        grid=grid,
        in_specs=[
            pl.BlockSpec((tm, d_in), lambda i: (i, 0)),        # x: tiled over batch
            pl.BlockSpec((d_in, _H0), lambda i: (0, 0)),       # w0: VMEM-resident
            pl.BlockSpec((_H0, _H1), lambda i: (0, 0)),        # w1: VMEM-resident
            pl.BlockSpec((_H1, _OUT_PAD), lambda i: (0, 0)),   # w2: VMEM-resident
            pl.BlockSpec((1, _B_LANES), lambda i: (0, 0)),     # packed biases
        ],
        out_specs=pl.BlockSpec((tm, out_dim), lambda i: (i, 0)),
        compiler_params=pltpu.CompilerParams(
            dimension_semantics=("parallel",)),
        cost_estimate=pl.CostEstimate(
            flops=flops, transcendentals=0, bytes_accessed=bytes_accessed),
    )(x, w0, w1, w2, bias)
    return out


def init_params(key, input_dim, output_dim):
    """nn.Linear default init: U(-1/sqrt(fan_in), +1/sqrt(fan_in)). W stored [d_in, d_out]."""
    dims = [input_dim, _H0, _H1, output_dim]
    params = []
    for i in range(len(dims) - 1):
        d_in, d_out = dims[i], dims[i + 1]
        key, kw, kb = jax.random.split(key, 3)
        bound = 1.0 / np.sqrt(d_in)
        w = jax.random.uniform(kw, (d_in, d_out), jnp.float32, -bound, bound)
        b = jax.random.uniform(kb, (d_out,), jnp.float32, -bound, bound)
        params.append((w, b))
    return params


def pack_params(params, output_dim):
    """Zero-pad the last weight to 128 lanes and pack biases lane-contiguously (1, 512)."""
    (w0, b0), (w1, b1), (w2, b2) = params
    w2p = jnp.zeros((_H1, _OUT_PAD), jnp.float32).at[:, :output_dim].set(w2)
    bias = jnp.zeros((1, _B_LANES), jnp.float32)
    bias = (bias.at[0, _B_OFF0:_B_OFF0 + _H0].set(b0)
                .at[0, _B_OFF1:_B_OFF1 + _H1].set(b1)
                .at[0, _B_OFF2:_B_OFF2 + output_dim].set(b2))
    return (w0.astype(jnp.float32), w1.astype(jnp.float32), w2p, bias)


def generator_reference_f32(x, params):
    """Full-f32 reference matching the original PyTorch module semantics."""
    h = x.astype(jnp.float32)
    for li, (w, b) in enumerate(params):
        h = jnp.dot(h, w, preferred_element_type=jnp.float32,
                    precision=jax.lax.Precision.HIGHEST) + b
        if li < 2:
            h = jnp.maximum(h, 0.0)
    return h


if __name__ == "__main__":
    key = jax.random.PRNGKey(0)
    key, kx = jax.random.split(key)

    batch = 16
    input_dim = 32
    output_dim_z = 8

    x = jax.random.normal(kx, (batch, input_dim), jnp.float32)
    params = init_params(key, input_dim, output_dim_z)
    packed = pack_params(params, output_dim_z)

    out = generator_forward(x, packed, out_dim=output_dim_z)
    out = jax.block_until_ready(out)
    assert out.shape == (batch, output_dim_z), out.shape

    # Check against the full-f32 PyTorch-semantics forward. Tolerance allows for
    # MXU matmul rounding differences vs. the HIGHEST-precision XLA reference.
    ref = jax.block_until_ready(generator_reference_f32(x, params))
    np.testing.assert_allclose(np.asarray(out), np.asarray(ref), rtol=2e-2, atol=2e-2)

    print("KERNEL_OK")
</pallas_src>

<mosaic_0001>
module attributes {stable_mosaic.version = 11 : i64} {
  func.func @generator_kernel(%arg0: i32, %arg1: memref<16x32xf32, #tpu.memory_space<vmem>>, %arg2: memref<32x256xf32, #tpu.memory_space<vmem>>, %arg3: memref<256x128xf32, #tpu.memory_space<vmem>>, %arg4: memref<128x128xf32, #tpu.memory_space<vmem>>, %arg5: memref<1x512xf32, #tpu.memory_space<vmem>>, %arg6: memref<16x8xf32, #tpu.memory_space<vmem>>) attributes {dimension_semantics = [#tpu.dimension_semantics<parallel>], iteration_bounds = array<i64: 1>, scalar_prefetch = 0 : i64, scratch_operands = 0 : i64, tpu.core_type = #tpu.core_type<tc>, window_params = [{transform_indices = @transform_0, window_bounds = array<i64: 16, 32>}, {pipeline_mode = #tpu.pipeline_mode<synchronous>, transform_indices = @transform_1, window_bounds = array<i64: 32, 256>}, {pipeline_mode = #tpu.pipeline_mode<synchronous>, transform_indices = @transform_2, window_bounds = array<i64: 256, 128>}, {pipeline_mode = #tpu.pipeline_mode<synchronous>, transform_indices = @transform_3, window_bounds = array<i64: 128, 128>}, {pipeline_mode = #tpu.pipeline_mode<synchronous>, transform_indices = @transform_4, window_bounds = array<i64: 1, 512>}, {transform_indices = @transform_5, window_bounds = array<i64: 16, 8>}]} {
    %c0 = arith.constant 0 : index
    %c0_0 = arith.constant 0 : index
    %0 = vector.load %arg1[%c0, %c0_0] : memref<16x32xf32, #tpu.memory_space<vmem>>, vector<16x32xf32>
    %c0_1 = arith.constant 0 : index
    %c0_2 = arith.constant 0 : index
    %1 = vector.load %arg2[%c0_1, %c0_2] : memref<32x256xf32, #tpu.memory_space<vmem>>, vector<32x256xf32>
    %cst = arith.constant dense<0.000000e+00> : vector<16x256xf32>
    %2 = tpu.matmul %0, %1, %cst {dimension_numbers = #tpu.dot_dimension_numbers<[1], [0], [0], [1], [0, 0, 1, 1], [], []>} : vector<16x32xf32>, vector<32x256xf32>, vector<16x256xf32> -> vector<16x256xf32>
    %c0_3 = arith.constant 0 : index
    %c0_4 = arith.constant 0 : index
    %3 = vector.load %arg5[%c0_3, %c0_4] : memref<1x512xf32, #tpu.memory_space<vmem>>, vector<1x256xf32>
    %4 = vector.broadcast %3 : vector<1x256xf32> to vector<16x256xf32>
    %5 = arith.addf %2, %4 : vector<16x256xf32>
    %cst_5 = arith.constant 0.000000e+00 : f32
    %6 = vector.broadcast %cst_5 : f32 to vector<16x256xf32>
    %7 = arith.maximumf %5, %6 : vector<16x256xf32>
    %c0_6 = arith.constant 0 : index
    %c0_7 = arith.constant 0 : index
    %8 = vector.load %arg3[%c0_6, %c0_7] : memref<256x128xf32, #tpu.memory_space<vmem>>, vector<256x128xf32>
    %cst_8 = arith.constant dense<0.000000e+00> : vector<16x128xf32>
    %9 = tpu.matmul %7, %8, %cst_8 {dimension_numbers = #tpu.dot_dimension_numbers<[1], [0], [0], [1], [0, 0, 1, 1], [], []>} : vector<16x256xf32>, vector<256x128xf32>, vector<16x128xf32> -> vector<16x128xf32>
    %c0_9 = arith.constant 0 : index
    %c256 = arith.constant 256 : index
    %10 = vector.load %arg5[%c0_9, %c256] : memref<1x512xf32, #tpu.memory_space<vmem>>, vector<1x128xf32>
    %11 = vector.broadcast %10 : vector<1x128xf32> to vector<16x128xf32>
    %12 = arith.addf %9, %11 : vector<16x128xf32>
    %cst_10 = arith.constant 0.000000e+00 : f32
    %13 = vector.broadcast %cst_10 : f32 to vector<16x128xf32>
    %14 = arith.maximumf %12, %13 : vector<16x128xf32>
    %c0_11 = arith.constant 0 : index
    %c0_12 = arith.constant 0 : index
    %15 = vector.load %arg4[%c0_11, %c0_12] : memref<128x128xf32, #tpu.memory_space<vmem>>, vector<128x128xf32>
    %cst_13 = arith.constant dense<0.000000e+00> : vector<16x128xf32>
    %16 = tpu.matmul %14, %15, %cst_13 {dimension_numbers = #tpu.dot_dimension_numbers<[1], [0], [0], [1], [0, 0, 1, 1], [], []>} : vector<16x128xf32>, vector<128x128xf32>, vector<16x128xf32> -> vector<16x128xf32>
    %c0_14 = arith.constant 0 : index
    %c384 = arith.constant 384 : index
    %17 = vector.load %arg5[%c0_14, %c384] : memref<1x512xf32, #tpu.memory_space<vmem>>, vector<1x128xf32>
    %18 = vector.broadcast %17 : vector<1x128xf32> to vector<16x128xf32>
    %19 = arith.addf %16, %18 : vector<16x128xf32>
    %20 = vector.extract_strided_slice %19 {offsets = [0, 0], sizes = [16, 8], strides = [1, 1]} : vector<16x128xf32> to vector<16x8xf32>
    %c0_15 = arith.constant 0 : index
    %c0_16 = arith.constant 0 : index
    %21 = vector.load %arg6[%c0_15, %c0_16] : memref<16x8xf32, #tpu.memory_space<vmem>>, vector<16x8xf32>
    tpu.vector_store %arg6[%c0_15, %c0_16], %20 {strides = array<i32>} : memref<16x8xf32, #tpu.memory_space<vmem>>, vector<16x8xf32>,
    return
  }
  func.func @transform_0(%arg0: i32) -> (i32, i32) {
    %c0_i32 = arith.constant 0 : i32
    %c0_i32_0 = arith.constant 0 : i32
    return %arg0, %c0_i32 : i32, i32
  }
  func.func @transform_1(%arg0: i32) -> (i32, i32) {
    %c0_i32 = arith.constant 0 : i32
    %c0_i32_0 = arith.constant 0 : i32
    %c0_i32_1 = arith.constant 0 : i32
    return %c0_i32, %c0_i32_0 : i32, i32
  }
  func.func @transform_2(%arg0: i32) -> (i32, i32) {
    %c0_i32 = arith.constant 0 : i32
    %c0_i32_0 = arith.constant 0 : i32
    %c0_i32_1 = arith.constant 0 : i32
    return %c0_i32, %c0_i32_0 : i32, i32
  }
  func.func @transform_3(%arg0: i32) -> (i32, i32) {
    %c0_i32 = arith.constant 0 : i32
    %c0_i32_0 = arith.constant 0 : i32
    %c0_i32_1 = arith.constant 0 : i32
    return %c0_i32, %c0_i32_0 : i32, i32
  }
  func.func @transform_4(%arg0: i32) -> (i32, i32) {
    %c0_i32 = arith.constant 0 : i32
    %c0_i32_0 = arith.constant 0 : i32
    %c0_i32_1 = arith.constant 0 : i32
    return %c0_i32, %c0_i32_0 : i32, i32
  }
  func.func @transform_5(%arg0: i32) -> (i32, i32) {
    %c0_i32 = arith.constant 0 : i32
    %c0_i32_0 = arith.constant 0 : i32
    return %arg0, %c0_i32 : i32, i32
  }
}

</mosaic_0001>

<bundles_post_ra>
// kernel: tpu_custom_call.1
= control target key start
LH: loop header
LB: loop body
LE: loop exit
PB: predicated region body
PF: predicated region fallthrough
CT: control target
= control target key end

     0   :  { %10 = vsyncpa [#allocation3], 0  ;;  %s667_s0 = inlined_call_operand.hbm [shape: f32[16,32], index: 0, kind: input, shape index: {}]   ;;  %s668_s1 = inlined_call_operand.hbm [shape: f32[32,256], index: 1, kind: input, shape index: {}]   ;;  %s669_s2 = inlined_call_operand.hbm [shape: f32[256,128], index: 2, kind: input, shape index: {}]   ;;  %s670_s3 = inlined_call_operand.hbm [shape: f32[128,128], index: 3, kind: input, shape index: {}]   ;;  %s671_s4 = inlined_call_operand.vmem [shape: f32[1,512], index: 4, kind: input, shape index: {}]   ;;  %s672_s5 = inlined_call_operand.vmem [shape: f32[16,8], index: 5, kind: output, shape index: {}]  }
   0x1   :  { %11 = vsyncpa [#allocation5], 0 }
   0x2   :  { %12 = vsyncpa [#allocation8], 0  ;;  %s599_s18 = smov [#allocation4]  }
   0x3   :  { %s30_s19 = sshll.u32 %s599_s18, 4  ;;  %s31_s19 = int_to_ptr.vmem [resolvable:$true] %s30_s19 }
   0x4   :  { %s521_s20 = scalar_lea.vmem %s31_s19, 1024  ;;  %p526_p1 = scmp.lt.s32.totalorder %s31_s19, %s31_s19 }
   0x5   :  { %p522_p0 = scmp.ne.s32.totalorder %s31_s19, %s521_s20  ;;  %p527_p2 = scmp.lt.s32.totalorder %s521_s20, %s521_s20 }
   0x7   :  { %p528_p3 = por %p527_p2, %p526_p1 }
   0x9   :  { %p529_p4 = pnand %p528_p3, %p522_p0 }
   0xb   :  { %532 = shalt.err (!%p529_p4)
}
   0xc   :  { %s600_s21 = smov 256   ;;  %s601_s22 = smov 16  }
   0xd   :  { %36 = dma.hbm_to_vmem [thread:$0]  %s668_s1, 1024, %s31_s19, [#allocation5], %s600_s21, %s600_s21, %s601_s22  }
   0xe   :  { %s602_s25 = smov [#allocation2]  }
   0xf   :  { %s18_s26 = sshll.u32 %s602_s25, 4  ;;  %s19_s26 = int_to_ptr.vmem [resolvable:$true] %s18_s26 }
  0x10   :  { %s541_s27 = scalar_lea.vmem %s19_s26, 256  ;;  %p546_p6 = scmp.lt.s32.totalorder %s19_s26, %s19_s26 }
  0x11   :  { %p542_p5 = scmp.ne.s32.totalorder %s19_s26, %s541_s27  ;;  %p547_p7 = scmp.lt.s32.totalorder %s541_s27, %s541_s27 }
  0x13   :  { %p548_p8 = por %p547_p7, %p546_p6 }
  0x15   :  { %p549_p9 = pnand %p548_p8, %p542_p5 }
  0x17   :  { %552 = shalt.err (!%p549_p9)
}
  0x18   :  { %s603_s28 = smov 128   ;;  %s604_s29 = smov 8  }
  0x19   :  { %24 = dma.hbm_to_vmem [thread:$0]  %s667_s0, 256, %s19_s26, [#allocation3], %s603_s28, %s603_s28, %s604_s29  }
  0x1a   :  { %s605_s7 = smov [#allocation6]   ;;  %s606_s9 = smov [#allocation7]  }
  0x1b   :  { %s42_s8 = sshll.u32 %s605_s7, 4  ;;  %s54_s1 = sshll.u32 %s606_s9, 4  ;;  %s43_s8 = int_to_ptr.vmem [resolvable:$true] %s42_s8  ;;  %s55_s1 = int_to_ptr.vmem [resolvable:$true] %s54_s1 }
  0x1c   :  { %s561_s10 = scalar_lea.vmem %s43_s8, 4096  ;;  %p566_p11 = scmp.lt.s32.totalorder %s43_s8, %s43_s8 }
  0x1d   :  { %p562_p10 = scmp.ne.s32.totalorder %s43_s8, %s561_s10  ;;  %p567_p12 = scmp.lt.s32.totalorder %s561_s10, %s561_s10 }
  0x1f   :  { %p568_p13 = por %p567_p12, %p566_p11 }
  0x21   :  { %p569_p0 = pnand %p568_p13, %p562_p10 }
  0x23   :  { %572 = shalt.err (!%p569_p0)
}
  0x24   :  { %48 = dma.hbm_to_vmem [thread:$0]  %s669_s2, 4096, %s43_s8, [#allocation5], %s603_s28, %s603_s28, %s604_s29  }
  0x25   :  { %s581_s13 = scalar_lea.vmem %s55_s1, 2048  ;;  %p586_p2 = scmp.lt.s32.totalorder %s55_s1, %s55_s1 }
  0x26   :  { %p582_p1 = scmp.ne.s32.totalorder %s55_s1, %s581_s13  ;;  %p587_p3 = scmp.lt.s32.totalorder %s581_s13, %s581_s13 }
  0x28   :  { %p588_p4 = por %p587_p3, %p586_p2 }
  0x2a   :  { %p589_p5 = pnand %p588_p4, %p582_p1 }
  0x2c   :  { %592 = shalt.err (!%p589_p5)
}
  0x2d   :  { %60 = dma.hbm_to_vmem [thread:$0]  %s670_s3, 2048, %s55_s1, [#allocation8], %s603_s28, %s603_s28, %s604_s29  }
  0x2e   :  { %593 = dma.done.wait [#allocation3], 256  }
  0x2f   :  { %594 = vsyncadd [#allocation3], 4294967040 }
  0x30   :  { %595 = dma.done.wait [#allocation5], 5120  }
  0x31   :  { %596 = vsyncadd [#allocation5], 4294962176 }
  0x32   :  { %597 = dma.done.wait [#allocation8], 2048  }
  0x33   :  { %598 = vsyncadd [#allocation8], 4294965248  ;;  %v607_v0 = vmov 0.0   ;;  %v84_v1 = vld [vmem:[#allocation4 + $0x38] sm:$0xff]  ;;  %v83_v2 = vld [vmem:[#allocation4 + $0x30] sm:$0xff]  ;;  %vm97_vm0 = vcmask 261120   ;;  %v87_v53 = vlaneseq }
  0x34   :  { %168 = vmatprep.mubr.f32.mxu0 %v607_v0  ;;  %v82_v3 = vld [vmem:[#allocation4 + $0x28] sm:$0xff]  ;;  %128 = vmatprep.subr.mxu0 %v84_v1  ;;  %v81_v4 = vld [vmem:[#allocation4 + $0x20] sm:$0xff]  ;;  %v80_v5 = vld [vmem:[#allocation4 + $0x18] sm:$0xff]  ;;  %vm399_vm1 = vcmask 64512  }
  0x35   :  { %129 = vmatpush1.msra.mxu0 %v83_v2  ;;  %v79_v6 = vld [vmem:[#allocation4 + $0x10] sm:$0xff]  ;;  %v216_v7 = vld [vmem:[#allocation6 + $0xf8] sm:$0xff]  ;;  %v78_v9 = vld [vmem:[#allocation4 + $0x8] sm:$0xff]  ;;  %v88_v54 = vshrl.u32 %v87_v53, 7 }
  0x36   :  { %130 = vmatprep.subr.mxu0 %v82_v3  ;;  %v200_v8 = vld [vmem:[#allocation6 + $0x78] sm:$0xff]  ;;  %413 = vmatprep.subr.mxu1 %v216_v7  ;;  %v215_v10 = vld [vmem:[#allocation6 + $0xf0] sm:$0xff]  ;;  %v77_v12 = vld [vmem:[#allocation4] sm:$0xff] }
  0x37   :  { %131 = vmatpush1.msra.mxu0 %v81_v4  ;;  %v199_v11 = vld [vmem:[#allocation6 + $0x70] sm:$0xff]  ;;  %414 = vmatpush3.msra.mxu1 %v200_v8  ;;  %v214_v13 = vld [vmem:[#allocation6 + $0xe8] sm:$0xff]  ;;  %v213_v16 = vld [vmem:[#allocation6 + $0xe0] sm:$0xff]  ;;  %v89_v55 = vsub.s32 0, %v88_v54  ;;  %v93_v57 = vsub.s32 1, %v88_v54 }
  0x38   :  { %132 = vmatprep.subr.mxu0 %v80_v5  ;;  %v75_v14 = vld [vmem:[#allocation2] sm:$0xff]  ;;  %415 = vmatprep.subr.mxu1 %v215_v10  ;;  %v198_v15 = vld [vmem:[#allocation6 + $0x68] sm:$0xff]  ;;  %v197_v17 = vld [vmem:[#allocation6 + $0x60] sm:$0xff] }
  0x39   :  { %133 = vmatpush1.msra.mxu0 %v79_v6  ;;  %416 = vmatpush3.msra.mxu1 %v199_v11  ;;  %v212_v18 = vld [vmem:[#allocation6 + $0xd8] sm:$0xff]  ;;  %v211_v21 = vld [vmem:[#allocation6 + $0xd0] sm:$0xff]  ;;  %v210_v23 = vld [vmem:[#allocation6 + $0xc8] sm:$0xff] }
  0x3a   :  { %134 = vmatprep.subr.mxu0 %v78_v9  ;;  %417 = vmatprep.subr.mxu1 %v214_v13  ;;  %v76_v19 = vld [vmem:[#allocation2 + $0x8] sm:$0xff]  ;;  %v195_v22 = vld [vmem:[#allocation6 + $0x50] sm:$0xff]  ;;  %v194_v24 = vld [vmem:[#allocation6 + $0x48] sm:$0xff] }
  0x3b   :  { %135 = vmatpush1.msra.mxu0 %v77_v12  ;;  %418 = vmatpush3.msra.mxu1 %v198_v15  ;;  %v196_v20 = vld [vmem:[#allocation6 + $0x58] sm:$0xff]  ;;  %v209_v25 = vld [vmem:[#allocation6 + $0xc0] sm:$0xff]  ;;  %v207_v29 = vld [vmem:[#allocation6 + $0xb0] sm:$0xff] }
  0x3c   :  { %409 = vmatmul.mubr.msk.f32.vlgmr.msra.gmra.mxu0 %vm97_vm0, %v75_v14  ;;  %419 = vmatprep.subr.mxu1 %v213_v16  ;;  %v193_v26 = vld [vmem:[#allocation6 + $0x40] sm:$0xff]  ;;  %v208_v27 = vld [vmem:[#allocation6 + $0xb8] sm:$0xff]  ;;  %v191_v30 = vld [vmem:[#allocation6 + $0x30] sm:$0xff] }
  0x3d   :  { %174 = vmatprep.mubr.f32.mxu0 %v607_v0  ;;  %420 = vmatpush3.msra.mxu1 %v197_v17  ;;  %v192_v28 = vld [vmem:[#allocation6 + $0x38] sm:$0xff]  ;;  %v206_v31 = vld [vmem:[#allocation6 + $0xa8] sm:$0xff]  ;;  %v205_v33 = vld [vmem:[#allocation6 + $0xa0] sm:$0xff] }
  0x3e   :  { %421 = vmatprep.subr.mxu1 %v212_v18  ;;  %v190_v32 = vld [vmem:[#allocation6 + $0x28] sm:$0xff]  ;;  %v189_v34 = vld [vmem:[#allocation6 + $0x20] sm:$0xff]  ;;  %v204_v35 = vld [vmem:[#allocation6 + $0x98] sm:$0xff] }
  0x3f   :  { %422 = vmatpush3.msra.mxu1 %v196_v20  ;;  %v188_v36 = vld [vmem:[#allocation6 + $0x18] sm:$0xff]  ;;  %v203_v37 = vld [vmem:[#allocation6 + $0x90] sm:$0xff]  ;;  %v202_v39 = vld [vmem:[#allocation6 + $0x88] sm:$0xff] }
  0x40   :  { %410 = vmatmul.mubr.msk.f32.gmra.mxu0 %vm97_vm0, %v76_v19  ;;  %423 = vmatprep.subr.mxu1 %v211_v21  ;;  %v187_v38 = vld [vmem:[#allocation6 + $0x10] sm:$0xff]  ;;  %v186_v40 = vld [vmem:[#allocation6 + $0x8] sm:$0xff]  ;;  %v201_v41 = vld [vmem:[#allocation6 + $0x80] sm:$0xff] }
  0x41   :  { %424 = vmatpush3.msra.mxu1 %v195_v22  ;;  %v185_v42 = vld [vmem:[#allocation6] sm:$0xff]  ;;  %v316_v43 = vld [vmem:[#allocation7 + $0x78] sm:$0xff]  ;;  %v315_v44 = vld [vmem:[#allocation7 + $0x70] sm:$0xff] }
  0x42   :  { %425 = vmatprep.subr.mxu1 %v210_v23  ;;  %469 = vmatprep.subr.mxu0 %v316_v43  ;;  %v314_v45 = vld [vmem:[#allocation7 + $0x68] sm:$0xff]  ;;  %v313_v46 = vld [vmem:[#allocation7 + $0x60] sm:$0xff]  ;;  %v312_v47 = vld [vmem:[#allocation7 + $0x58] sm:$0xff] }
  0x43   :  { %426 = vmatpush3.msra.mxu1 %v194_v24  ;;  %470 = vmatpush3.msra.mxu0 %v316_v43  ;;  %v311_v48 = vld [vmem:[#allocation7 + $0x50] sm:$0xff]  ;;  %v310_v49 = vld [vmem:[#allocation7 + $0x48] sm:$0xff]  ;;  %v309_v50 = vld [vmem:[#allocation7 + $0x40] sm:$0xff] }
  0x44   :  { %427 = vmatprep.subr.mxu1 %v209_v25  ;;  %471 = vmatprep.subr.mxu0 %v315_v44  ;;  %v308_v51 = vld [vmem:[#allocation7 + $0x38] sm:$0xff]  ;;  %v307_v52 = vld [vmem:[#allocation7 + $0x30] sm:$0xff]  ;;  %v306_v8 = vld [vmem:[#allocation7 + $0x28] sm:$0xff] }
  0x45   :  { %428 = vmatpush3.msra.mxu1 %v193_v26  ;;  %472 = vmatpush3.msra.mxu0 %v315_v44  ;;  %v85_v56 = vld [vmem:[%s671_s4] sm:$0x3]  ;;  %v305_v9 = vld [vmem:[#allocation7 + $0x20] sm:$0xff]  ;;  %v304_v10 = vld [vmem:[#allocation7 + $0x18] sm:$0xff] }
  0x46   :  { %429 = vmatprep.subr.mxu1 %v208_v27  ;;  %473 = vmatprep.subr.mxu0 %v314_v45  ;;  %v90_v58 = vrot.slane %v85_v56, %v89_v55  ;;  %v94_v59 = vrot.slane %v85_v56, %v93_v57  ;;  %v303_v11 = vld [vmem:[#allocation7 + $0x10] sm:$0xff]  ;;  %v302_v12 = vld [vmem:[#allocation7 + $0x8] sm:$0xff]  ;;  %v301_v13 = vld [vmem:[#allocation7] sm:$0xff] }
  0x47   :  { %430 = vmatpush3.msra.mxu1 %v192_v28  ;;  %474 = vmatpush3.msra.mxu0 %v314_v45  ;;  %v411_v15 = vld [vmem:[%s671_s4 + $0x2] ss:$0 sm:$0xff]  ;;  %v412_v25 = vld [vmem:[%s671_s4 + $0x3] ss:$0 sm:$0xff] }
  0x48   :  { %431 = vmatprep.subr.mxu1 %v207_v29  ;;  %475 = vmatprep.subr.mxu0 %v313_v46 }
  0x49   :  { %432 = vmatpush3.msra.mxu1 %v191_v30  ;;  %476 = vmatpush3.msra.mxu0 %v313_v46 }
  0x4a   :  { %433 = vmatprep.subr.mxu1 %v206_v31  ;;  %477 = vmatprep.subr.mxu0 %v312_v47 }
  0x4b   :  { %434 = vmatpush3.msra.mxu1 %v190_v32  ;;  %478 = vmatpush3.msra.mxu0 %v312_v47 }
  0x4c   :  { %435 = vmatprep.subr.mxu1 %v205_v33  ;;  %479 = vmatprep.subr.mxu0 %v311_v48 }
  0x4d   :  { %436 = vmatpush3.msra.mxu1 %v189_v34  ;;  %480 = vmatpush3.msra.mxu0 %v311_v48 }
  0x4e   :  { %437 = vmatprep.subr.mxu1 %v204_v35  ;;  %481 = vmatprep.subr.mxu0 %v310_v49 }
  0x4f   :  { %438 = vmatpush3.msra.mxu1 %v188_v36  ;;  %482 = vmatpush3.msra.mxu0 %v310_v49 }
  0x50   :  { %439 = vmatprep.subr.mxu1 %v203_v37  ;;  %483 = vmatprep.subr.mxu0 %v309_v50 }
  0x51   :  { %440 = vmatpush3.msra.mxu1 %v187_v38  ;;  %484 = vmatpush3.msra.mxu0 %v309_v50 }
  0x52   :  { %441 = vmatprep.subr.mxu1 %v202_v39  ;;  %485 = vmatprep.subr.mxu0 %v308_v51 }
  0x53   :  { %442 = vmatpush3.msra.mxu1 %v186_v40  ;;  %486 = vmatpush3.msra.mxu0 %v308_v51 }
  0x54   :  { %443 = vmatprep.subr.mxu1 %v201_v41  ;;  %487 = vmatprep.subr.mxu0 %v307_v52 }
  0x55   :  { %444 = vmatpush3.msra.mxu1 %v185_v42  ;;  %488 = vmatpush3.msra.mxu0 %v307_v52 }
  0x56   :  { %489 = vmatprep.subr.mxu0 %v306_v8 }
  0x57   :  { %490 = vmatpush3.msra.mxu0 %v306_v8 }
  0x58   :  { %491 = vmatprep.subr.mxu0 %v305_v9 }
  0x59   :  { %492 = vmatpush3.msra.mxu0 %v305_v9 }
  0x5a   :  { %493 = vmatprep.subr.mxu0 %v304_v10 }
  0x5b   :  { %494 = vmatpush3.msra.mxu0 %v304_v10 }
  0x5c   :  { %495 = vmatprep.subr.mxu0 %v303_v11 }
  0x5d   :  { %496 = vmatpush3.msra.mxu0 %v303_v11 }
  0x5e   :  { %497 = vmatprep.subr.mxu0 %v302_v12 }
  0x5f   :  { %498 = vmatpush3.msra.mxu0 %v302_v12 }
  0x60   :  { %499 = vmatprep.subr.mxu0 %v301_v13 }
  0x61   :  { %500 = vmatpush3.msra.mxu0 %v301_v13 }
  0xfc   :  { %v170_v60 = vpop.f32.mrf.mxu0 }
  0xfd   :  { %v171_v61 = vadd.f32 %v170_v60, %v90_v58 }
  0xfe   :  { %v172_v62 = vpop.f32.mrf.mxu0 }
  0xff   :  { %v173_v63 = vadd.f32 %v172_v62, %v94_v59  ;;  %v181_v2 = vmax.f32 %v171_v61, 0.0 }
 0x100   :  { %v176_v0 = vpop.f32.mrf.mxu0 }
 0x101   :  { %v182_v1 = vmax.f32 %v173_v63, 0.0  ;;  %v177_v3 = vadd.f32 %v176_v0, %v90_v58 }
 0x102   :  { %v178_v4 = vpop.f32.mrf.mxu0 }
 0x103   :  { %v179_v5 = vadd.f32 %v178_v4, %v94_v59  ;;  %288 = vmatprep.mubr.f32.mxu1 %v182_v1  ;;  %v183_v7 = vmax.f32 %v177_v3, 0.0 }
 0x104   :  { %289 = vmatmul.mubr.f32.vlgmr.msra.gmra.mxu1 %v181_v2 }
 0x105   :  { %v184_v6 = vmax.f32 %v179_v5, 0.0 }
 0x107   :  { %293 = vmatprep.mubr.f32.mxu1 %v184_v6 }
 0x108   :  { %294 = vmatmul.mubr.f32.gmra.mxu1 %v183_v7 }
 0x1c4   :  { %v445_v14 = vpop.f32.mrf.mxu1 }
 0x1c6   :  { %v446_v16 = vpop.f32.mrf.mxu1 }
 0x1c7   :  { %v447_v17 = vadd.f32 %v446_v16, %v445_v14 }
 0x1c8   :  { %v448_v18 = vpop.f32.mrf.mxu1 }
 0x1c9   :  { %v291_v19 = vadd.f32 %v447_v17, %v411_v15 }
 0x1ca   :  { %v449_v20 = vpop.f32.mrf.mxu1 }
 0x1cb   :  { %v299_v21 = vmax.f32 %v291_v19, 0.0  ;;  %v450_v22 = vadd.f32 %v449_v20, %v448_v18 }
 0x1cd   :  { %v296_v23 = vadd.f32 %v450_v22, %v411_v15  ;;  %501 = vmatprep.mubr.f32.mxu0 %v299_v21 }
 0x1cf   :  { %v300_v24 = vmax.f32 %v296_v23, 0.0 }
 0x1d1   :  { %502 = vmatmul.mubr.f32.vlgmr.msra.gmra.mxu0 %v300_v24 }
 0x291   :  { %v503_v26 = vpop.f32.mrf.mxu0 }
 0x292   :  { %v396_v27 = vadd.f32 %v503_v26, %v412_v25 }
 0x293   :  { %v390_v28 = vpop.f32.mrf.mxu0 }
 0x294   :  { %401 = vst.msk [vmem:[%s672_s5 + $0x8] sm:$0xff] %vm399_vm1, %v396_v27  ;;  %v391_v29 = vadd.f32 %v412_v25, %v390_v28 }
 0x296   :  { %400 = vst.msk [vmem:[%s672_s5] sm:$0xff] %vm399_vm1, %v391_v29 }
 0x297   :  { %406 = vsyncpa [#allocation3], 1 }
 0x298   :  { %407 = vsyncpa [#allocation5], 1 }
 0x299   :  { %408 = vsyncpa [#allocation8], 1 }

</bundles_post_ra>
